<compile_context>
chip_gen: v6e
topology: v6e:2x2x1
jax: 0.10.0
libtpu: 0.0.40
codegen_flags: <defaults>
</compile_context>

<pallas_src>
import functools

import jax
import jax.numpy as jnp
from jax.experimental import pallas as pl
from jax.experimental.pallas import tpu as pltpu


# ---------------------------------------------------------------------------
# Kernels
# ---------------------------------------------------------------------------
def _se_single_pass_kernel(x_ref, wrt_ref, br_ref, wet_ref, be_ref, o_ref):
    """One grid step = (bt, C, HW) slab: squeeze -> gate -> excite."""
    # ---- squeeze: AdaptiveAvgPool2d(1) == mean over the lane (HW) axis -----
    pooled = jnp.mean(x_ref[...], axis=2, dtype=jnp.float32)            # (bt, C)

    # ---- 1x1 reduce conv + SiLU, 1x1 expand conv + sigmoid (MXU dots) ------
    s = jnp.dot(pooled, wrt_ref[...].astype(jnp.float32),
                preferred_element_type=jnp.float32)                      # (bt, C_se)
    s = s + br_ref[...].astype(jnp.float32)
    s = s * (1.0 / (1.0 + jnp.exp(-s)))                                  # SiLU / swish
    e = jnp.dot(s, wet_ref[...].astype(jnp.float32),
                preferred_element_type=jnp.float32)                      # (bt, C)
    e = e + be_ref[...].astype(jnp.float32)
    gate = 1.0 / (1.0 + jnp.exp(-e))                                     # sigmoid

    # ---- excite: re-read the VMEM block (keeps vreg pressure low) ----------
    g = gate[:, :, None].astype(o_ref.dtype)                             # (bt, C, 1)
    o_ref[...] = (x_ref[...] * g).astype(o_ref.dtype)


def _pool_gate_kernel(x_ref, wr_ref, br_ref, we_ref, be_ref, gate_ref, *,
                      hw: int, hw_t: int, need_mask: bool):
    """Two-pass path, pass 1: accumulate channel sums over HW tiles, emit gate."""
    t = pl.program_id(1)

    @pl.when(t == 0)
    def _():
        gate_ref[...] = jnp.zeros_like(gate_ref)

    xblk = x_ref[...].astype(jnp.float32)                                # (1, C, hw_t)
    if need_mask:
        pos = t * hw_t + jax.lax.broadcasted_iota(jnp.int32, xblk.shape, 2)
        xblk = jnp.where(pos < hw, xblk, 0.0)
    gate_ref[...] += jnp.sum(xblk, axis=2, keepdims=True)                # (1, C, 1)

    @pl.when(t == pl.num_programs(1) - 1)
    def _():
        pooled = gate_ref[0] * (1.0 / hw)                                # (C, 1)
        s = jnp.dot(wr_ref[...].astype(jnp.float32), pooled,
                    preferred_element_type=jnp.float32)                   # (C_se, 1)
        s = s + br_ref[...].astype(jnp.float32)
        s = s * (1.0 / (1.0 + jnp.exp(-s)))                               # SiLU / swish
        e = jnp.dot(we_ref[...].astype(jnp.float32), s,
                    preferred_element_type=jnp.float32)                   # (C, 1)
        e = e + be_ref[...].astype(jnp.float32)
        gate_ref[...] = (1.0 / (1.0 + jnp.exp(-e)))[None, :, :]           # sigmoid gate


def _apply_gate_kernel(x_ref, gate_ref, o_ref):
    """Two-pass path, pass 2: stream one (1, C, hw_t) tile, multiply by gate."""
    g = gate_ref[...].astype(o_ref.dtype)                                # (1, C, 1)
    o_ref[...] = (x_ref[...] * g).astype(o_ref.dtype)


# ---------------------------------------------------------------------------
# Chip-aware sizing helpers
# ---------------------------------------------------------------------------
def _vmem_capacity_bytes() -> int:
    """Best-effort per-TensorCore VMEM capacity; conservative 64 MiB if unknown."""
    try:
        info = pltpu.get_tpu_info()
        for name in ("vmem_capacity_bytes", "vmem_bytes", "vmem_size_bytes"):
            cap = getattr(info, name, None)
            if cap:
                return int(cap)
    except Exception:  # older jax / non-TPU backends: stay conservative
        pass
    return 64 << 20


def _pick_batch_tile(batch, slab_bytes, pack_budget, vmem_clamp, headroom,
                     prefer_multi_step):
    """Largest batch tile whose double-buffered in+out slabs fit VMEM, or None."""
    fits = [bt for bt in range(1, batch + 1)
            if 4 * bt * slab_bytes + headroom <= vmem_clamp]
    if not fits:
        return None                                     # -> two-pass fallback
    packed = [bt for bt in fits if 4 * bt * slab_bytes <= pack_budget] or [min(fits)]
    if prefer_multi_step:
        # v7x-like: keep >= 2 grid steps so megacore can shard the grid.
        multi = [bt for bt in packed if pl.cdiv(batch, bt) >= 2]
        if multi:
            return max(multi)
        # TODO(synk): for B == 1 on multi-TensorCore chips, split HW into a
        # second grid axis (the two-pass path does this for free).
    return max(packed)


# ---------------------------------------------------------------------------
# Wrapper
# ---------------------------------------------------------------------------
def align_vision_squeeze_excite(x, w_reduce, b_reduce, w_expand, b_expand,
                                *, _force_two_pass=False, _hw_tile=None):
    """Forward of AlignVisionSqueezeExciteLayer.

    x:        (B, C, H, W) NCHW activations (PyTorch convention).
    w_reduce: (C_se, C)   1x1-conv reduce weight (kernel dims collapsed).
    b_reduce: (C_se,)
    w_expand: (C, C_se)   1x1-conv expand weight.
    b_expand: (C,)
    """
    B, C, H, W = x.shape
    HW = H * W
    C_se = w_reduce.shape[0]
    itemsize = jnp.dtype(x.dtype).itemsize
    x_flat = x.reshape(B, C, HW)            # native layout: no HBM transposes

    slab_bytes = C * HW * itemsize
    wt_bytes = (2 * C * C_se + C + C_se) * 4
    headroom = 4 * wt_bytes + (2 << 20)

    vmem_cap = _vmem_capacity_bytes()
    big_vmem = vmem_cap >= (96 << 20)        # v5e / v6e: 128 MiB per TensorCore
    if big_vmem:
        pack_budget = 28 << 20
        vmem_clamp = 100 << 20
        prefer_multi_step = False            # single TensorCore per chip
    else:                                     # v7x-like (64 MiB) or unknown
        pack_budget = 16 << 20
        vmem_clamp = 52 << 20
        prefer_multi_step = True              # 2 TensorCores: keep grid >= 2

    bt = None if _force_two_pass else _pick_batch_tile(
        B, slab_bytes, pack_budget, vmem_clamp, headroom, prefer_multi_step)

    if bt is not None:
        # ------------------------- fast single-pass path --------------------
        grid = (pl.cdiv(B, bt),)
        vmem_limit = int(min(vmem_clamp,
                             max(4 * bt * slab_bytes + headroom, 32 << 20)))
        cost = pl.CostEstimate(
            flops=int(2 * B * C * HW + 4 * B * C * C_se),
            transcendentals=int(B * (C + C_se)),
            bytes_accessed=int(2 * B * slab_bytes + wt_bytes),
        )
        out = pl.pallas_call(
            _se_single_pass_kernel,
            out_shape=jax.ShapeDtypeStruct((B, C, HW), x.dtype),
            grid_spec=pltpu.PrefetchScalarGridSpec(
                num_scalar_prefetch=0,
                grid=grid,
                in_specs=[
                    pl.BlockSpec((bt, C, HW), lambda b: (b, 0, 0)),      # x
                    pl.BlockSpec((C, C_se), lambda b: (0, 0)),           # w_reduce^T
                    pl.BlockSpec((1, C_se), lambda b: (0, 0)),           # b_reduce
                    pl.BlockSpec((C_se, C), lambda b: (0, 0)),           # w_expand^T
                    pl.BlockSpec((1, C), lambda b: (0, 0)),              # b_expand
                ],
                out_specs=pl.BlockSpec((bt, C, HW), lambda b: (b, 0, 0)),
            ),
            compiler_params=pltpu.CompilerParams(
                dimension_semantics=("parallel",),
                vmem_limit_bytes=vmem_limit,
            ),
            cost_estimate=cost,
        )(x_flat, jnp.transpose(w_reduce), b_reduce.reshape(1, C_se),
          jnp.transpose(w_expand), b_expand.reshape(1, C))
        return out.reshape(B, C, H, W)

    # --------------------- two-pass HW-tiled fallback path ------------------
    if _hw_tile is not None:
        hw_t = int(_hw_tile)
    else:
        per_lane = 4 * C * itemsize          # in+out double buffers per HW lane
        hw_t = max(128, (pack_budget // per_lane) // 128 * 128)
    if hw_t >= HW:
        hw_t = HW
    n_t = pl.cdiv(HW, hw_t)
    need_mask = (HW % hw_t) != 0
    # TODO(synk): if C is so large that a (C, 128) tile itself exceeds the VMEM
    # budget, a third (channel) tiling level would be needed; not implemented.

    gate_cost = pl.CostEstimate(
        flops=int(B * C * HW + 4 * B * C * C_se),
        transcendentals=int(B * (C + C_se)),
        bytes_accessed=int(B * slab_bytes + wt_bytes + 4 * B * C),
    )
    gate = pl.pallas_call(
        functools.partial(_pool_gate_kernel, hw=HW, hw_t=hw_t, need_mask=need_mask),
        out_shape=jax.ShapeDtypeStruct((B, C, 1), jnp.float32),
        grid_spec=pltpu.PrefetchScalarGridSpec(
            num_scalar_prefetch=0,
            grid=(B, n_t),
            in_specs=[
                pl.BlockSpec((1, C, hw_t), lambda b, t: (b, 0, t)),      # x tile
                pl.BlockSpec((C_se, C), lambda b, t: (0, 0)),            # w_reduce
                pl.BlockSpec((C_se, 1), lambda b, t: (0, 0)),            # b_reduce
                pl.BlockSpec((C, C_se), lambda b, t: (0, 0)),            # w_expand
                pl.BlockSpec((C, 1), lambda b, t: (0, 0)),               # b_expand
            ],
            out_specs=pl.BlockSpec((1, C, 1), lambda b, t: (b, 0, 0)),
        ),
        compiler_params=pltpu.CompilerParams(
            dimension_semantics=("parallel", "arbitrary"),
            vmem_limit_bytes=int(min(vmem_clamp,
                                     max(2 * C * hw_t * itemsize + headroom,
                                         32 << 20))),
        ),
        cost_estimate=gate_cost,
    )(x_flat, w_reduce, b_reduce.reshape(C_se, 1),
      w_expand, b_expand.reshape(C, 1))

    apply_cost = pl.CostEstimate(
        flops=int(B * C * HW),
        transcendentals=0,
        bytes_accessed=int(2 * B * slab_bytes + 4 * B * C),
    )
    out = pl.pallas_call(
        _apply_gate_kernel,
        out_shape=jax.ShapeDtypeStruct((B, C, HW), x.dtype),
        grid_spec=pltpu.PrefetchScalarGridSpec(
            num_scalar_prefetch=0,
            grid=(B, n_t),
            in_specs=[
                pl.BlockSpec((1, C, hw_t), lambda b, t: (b, 0, t)),      # x tile
                pl.BlockSpec((1, C, 1), lambda b, t: (b, 0, 0)),         # gate
            ],
            out_specs=pl.BlockSpec((1, C, hw_t), lambda b, t: (b, 0, t)),
        ),
        compiler_params=pltpu.CompilerParams(
            dimension_semantics=("parallel", "parallel"),
            vmem_limit_bytes=int(min(vmem_clamp,
                                     max(4 * C * hw_t * itemsize + headroom,
                                         32 << 20))),
        ),
        cost_estimate=apply_cost,
    )(x_flat, gate)
    return out.reshape(B, C, H, W)


# ---------------------------------------------------------------------------
# Reference & smoke test
# ---------------------------------------------------------------------------
def _reference(x, w_reduce, b_reduce, w_expand, b_expand):
    pooled = jnp.mean(x, axis=(2, 3), keepdims=True)                    # (B,C,1,1)
    s = jnp.einsum("oc,bcij->boij", w_reduce, pooled) + b_reduce[None, :, None, None]
    s = jax.nn.silu(s)
    e = jnp.einsum("oc,bcij->boij", w_expand, s) + b_expand[None, :, None, None]
    e = jax.nn.sigmoid(e)
    return x * e


def _make_inputs(key, dim, dim_se, B, H, W):
    kx, kwr, kbr, kwe, kbe = jax.random.split(key, 5)
    x = jax.random.normal(kx, (B, dim, H, W), dtype=jnp.float32)
    w_reduce = jax.random.normal(kwr, (dim_se, dim), dtype=jnp.float32) * 0.1
    b_reduce = jax.random.normal(kbr, (dim_se,), dtype=jnp.float32) * 0.1
    w_expand = jax.random.normal(kwe, (dim, dim_se), dtype=jnp.float32) * 0.1
    b_expand = jax.random.normal(kbe, (dim,), dtype=jnp.float32) * 0.1
    return x, w_reduce, b_reduce, w_expand, b_expand


if __name__ == "__main__":
    key = jax.random.PRNGKey(0)
    k1, k2, k3 = jax.random.split(key, 3)

    # Config mimicking AlignVisionSqueezeExciteLayer(in_dim=8, expand_dim=32,
    # expand=True), squeeze_expansion_ratio=0.25, hidden_act="swish".
    args = _make_inputs(k1, dim=32, dim_se=2, B=2, H=16, W=16)
    out = jax.block_until_ready(align_vision_squeeze_excite(*args))
    ref = _reference(*args)
    assert out.shape == args[0].shape and out.dtype == args[0].dtype
    assert jnp.allclose(out, ref, atol=1e-5, rtol=1e-5)

    # Small-spatial config (C=128, HW=16); B=3 exercises the cdiv batch grid
    # (partial last block) in the single-pass path -- no HBM transposes now.
    args2 = _make_inputs(k2, dim=128, dim_se=32, B=3, H=4, W=4)
    out2 = jax.block_until_ready(align_vision_squeeze_excite(*args2))
    ref2 = _reference(*args2)
    assert out2.shape == args2[0].shape and out2.dtype == args2[0].dtype
    assert jnp.allclose(out2, ref2, atol=1e-5, rtol=1e-5)

    # Force the two-pass HW-tiled fallback (used when per-image slabs exceed
    # VMEM) at a small shape so the path is covered by this smoke test.
    args3 = _make_inputs(k3, dim=16, dim_se=4, B=2, H=32, W=32)
    out3 = jax.block_until_ready(
        align_vision_squeeze_excite(*args3, _force_two_pass=True, _hw_tile=256))
    ref3 = _reference(*args3)
    assert out3.shape == args3[0].shape and out3.dtype == args3[0].dtype
    assert jnp.allclose(out3, ref3, atol=1e-5, rtol=1e-5)

    print("KERNEL_OK")
</pallas_src>

<mosaic_0001>
module attributes {stable_mosaic.version = 11 : i64} {
  func.func @_se_single_pass_kernel(%arg0: i32, %arg1: memref<1x32x256xf32, #tpu.memory_space<vmem>>, %arg2: memref<32x2xf32, #tpu.memory_space<vmem>>, %arg3: memref<1x2xf32, #tpu.memory_space<vmem>>, %arg4: memref<2x32xf32, #tpu.memory_space<vmem>>, %arg5: memref<1x32xf32, #tpu.memory_space<vmem>>, %arg6: memref<1x32x256xf32, #tpu.memory_space<vmem>>) attributes {dimension_semantics = [#tpu.dimension_semantics<parallel>], iteration_bounds = array<i64: 2>, scalar_prefetch = 0 : i64, scratch_operands = 0 : i64, tpu.core_type = #tpu.core_type<tc>, window_params = [{transform_indices = @transform_0, window_bounds = array<i64: 1, 32, 256>}, {pipeline_mode = #tpu.pipeline_mode<synchronous>, transform_indices = @transform_1, window_bounds = array<i64: 32, 2>}, {pipeline_mode = #tpu.pipeline_mode<synchronous>, transform_indices = @transform_2, window_bounds = array<i64: 1, 2>}, {pipeline_mode = #tpu.pipeline_mode<synchronous>, transform_indices = @transform_3, window_bounds = array<i64: 2, 32>}, {pipeline_mode = #tpu.pipeline_mode<synchronous>, transform_indices = @transform_4, window_bounds = array<i64: 1, 32>}, {transform_indices = @transform_5, window_bounds = array<i64: 1, 32, 256>}]} {
    %c0 = arith.constant 0 : index
    %c0_0 = arith.constant 0 : index
    %c0_1 = arith.constant 0 : index
    %0 = vector.load %arg1[%c0, %c0_0, %c0_1] : memref<1x32x256xf32, #tpu.memory_space<vmem>>, vector<1x32x256xf32>
    %cst = arith.constant dense<0.000000e+00> : vector<1x32xf32>
    %1 = vector.multi_reduction <add>, %0, %cst [2] : vector<1x32x256xf32> to vector<1x32xf32>
    %cst_2 = arith.constant 2.560000e+02 : f32
    %2 = vector.broadcast %cst_2 : f32 to vector<1x32xf32>
    %3 = arith.divf %1, %2 : vector<1x32xf32>
    %c0_3 = arith.constant 0 : index
    %c0_4 = arith.constant 0 : index
    %4 = vector.load %arg2[%c0_3, %c0_4] : memref<32x2xf32, #tpu.memory_space<vmem>>, vector<32x2xf32>
    %cst_5 = arith.constant dense<0.000000e+00> : vector<1x2xf32>
    %5 = tpu.matmul %3, %4, %cst_5 {dimension_numbers = #tpu.dot_dimension_numbers<[1], [0], [0], [1], [0, 0, 1, 1], [], []>} : vector<1x32xf32>, vector<32x2xf32>, vector<1x2xf32> -> vector<1x2xf32>
    %c0_6 = arith.constant 0 : index
    %c0_7 = arith.constant 0 : index
    %6 = vector.load %arg3[%c0_6, %c0_7] : memref<1x2xf32, #tpu.memory_space<vmem>>, vector<1x2xf32>
    %7 = arith.addf %5, %6 : vector<1x2xf32>
    %cst_8 = arith.constant 0.000000e+00 : f32
    %8 = vector.broadcast %cst_8 : f32 to vector<1x2xf32>
    %9 = arith.subf %8, %7 : vector<1x2xf32>
    %10 = math.exp %9 : vector<1x2xf32>
    %cst_9 = arith.constant 1.000000e+00 : f32
    %11 = vector.broadcast %cst_9 : f32 to vector<1x2xf32>
    %12 = arith.addf %11, %10 : vector<1x2xf32>
    %cst_10 = arith.constant 1.000000e+00 : f32
    %13 = vector.broadcast %cst_10 : f32 to vector<1x2xf32>
    %14 = arith.divf %13, %12 : vector<1x2xf32>
    %15 = arith.mulf %7, %14 : vector<1x2xf32>
    %c0_11 = arith.constant 0 : index
    %c0_12 = arith.constant 0 : index
    %16 = vector.load %arg4[%c0_11, %c0_12] : memref<2x32xf32, #tpu.memory_space<vmem>>, vector<2x32xf32>
    %cst_13 = arith.constant dense<0.000000e+00> : vector<1x32xf32>
    %17 = tpu.matmul %15, %16, %cst_13 {dimension_numbers = #tpu.dot_dimension_numbers<[1], [0], [0], [1], [0, 0, 1, 1], [], []>} : vector<1x2xf32>, vector<2x32xf32>, vector<1x32xf32> -> vector<1x32xf32>
    %c0_14 = arith.constant 0 : index
    %c0_15 = arith.constant 0 : index
    %18 = vector.load %arg5[%c0_14, %c0_15] : memref<1x32xf32, #tpu.memory_space<vmem>>, vector<1x32xf32>
    %19 = arith.addf %17, %18 : vector<1x32xf32>
    %cst_16 = arith.constant 0.000000e+00 : f32
    %20 = vector.broadcast %cst_16 : f32 to vector<1x32xf32>
    %21 = arith.subf %20, %19 : vector<1x32xf32>
    %22 = math.exp %21 : vector<1x32xf32>
    %cst_17 = arith.constant 1.000000e+00 : f32
    %23 = vector.broadcast %cst_17 : f32 to vector<1x32xf32>
    %24 = arith.addf %23, %22 : vector<1x32xf32>
    %cst_18 = arith.constant 1.000000e+00 : f32
    %25 = vector.broadcast %cst_18 : f32 to vector<1x32xf32>
    %26 = arith.divf %25, %24 : vector<1x32xf32>
    %27 = vector.shape_cast %26 : vector<1x32xf32> to vector<1x32x1xf32>
    %c0_19 = arith.constant 0 : index
    %c0_20 = arith.constant 0 : index
    %c0_21 = arith.constant 0 : index
    %28 = vector.load %arg1[%c0_19, %c0_20, %c0_21] : memref<1x32x256xf32, #tpu.memory_space<vmem>>, vector<1x32x256xf32>
    %29 = vector.broadcast %27 : vector<1x32x1xf32> to vector<1x32x256xf32>
    %30 = arith.mulf %28, %29 : vector<1x32x256xf32>
    %c0_22 = arith.constant 0 : index
    %c0_23 = arith.constant 0 : index
    %c0_24 = arith.constant 0 : index
    %31 = vector.load %arg6[%c0_22, %c0_23, %c0_24] : memref<1x32x256xf32, #tpu.memory_space<vmem>>, vector<1x32x256xf32>
    tpu.vector_store %arg6[%c0_22, %c0_23, %c0_24], %30 {strides = array<i32>} : memref<1x32x256xf32, #tpu.memory_space<vmem>>, vector<1x32x256xf32>,
    return
  }
  func.func @transform_0(%arg0: i32) -> (i32, i32, i32) {
    %c0_i32 = arith.constant 0 : i32
    %c0_i32_0 = arith.constant 0 : i32
    %c0_i32_1 = arith.constant 0 : i32
    return %arg0, %c0_i32, %c0_i32_0 : i32, i32, i32
  }
  func.func @transform_1(%arg0: i32) -> (i32, i32) {
    %c0_i32 = arith.constant 0 : i32
    %c0_i32_0 = arith.constant 0 : i32
    %c0_i32_1 = arith.constant 0 : i32
    return %c0_i32, %c0_i32_0 : i32, i32
  }
  func.func @transform_2(%arg0: i32) -> (i32, i32) {
    %c0_i32 = arith.constant 0 : i32
    %c0_i32_0 = arith.constant 0 : i32
    %c0_i32_1 = arith.constant 0 : i32
    return %c0_i32, %c0_i32_0 : i32, i32
  }
  func.func @transform_3(%arg0: i32) -> (i32, i32) {
    %c0_i32 = arith.constant 0 : i32
    %c0_i32_0 = arith.constant 0 : i32
    %c0_i32_1 = arith.constant 0 : i32
    return %c0_i32, %c0_i32_0 : i32, i32
  }
  func.func @transform_4(%arg0: i32) -> (i32, i32) {
    %c0_i32 = arith.constant 0 : i32
    %c0_i32_0 = arith.constant 0 : i32
    %c0_i32_1 = arith.constant 0 : i32
    return %c0_i32, %c0_i32_0 : i32, i32
  }
  func.func @transform_5(%arg0: i32) -> (i32, i32, i32) {
    %c0_i32 = arith.constant 0 : i32
    %c0_i32_0 = arith.constant 0 : i32
    %c0_i32_1 = arith.constant 0 : i32
    return %arg0, %c0_i32, %c0_i32_0 : i32, i32, i32
  }
}

</mosaic_0001>

<bundles_post_ra>
// kernel: tpu_custom_call.1
= control target key start
LH: loop header
LB: loop body
LE: loop exit
PB: predicated region body
PF: predicated region fallthrough
CT: control target
= control target key end

     0   :  { %10 = vsyncpa [#allocation3], 0  ;;  %s1037_s0 = inlined_call_operand.hbm [shape: f32[2,32,256], index: 0, kind: input, shape index: {}]   ;;  %s1038_s1 = inlined_call_operand.vmem [shape: f32[32,2], index: 1, kind: input, shape index: {}]   ;;  %s1039_s2 = inlined_call_operand.vmem [shape: f32[1,2], index: 2, kind: input, shape index: {}]   ;;  %s1040_s3 = inlined_call_operand.vmem [shape: f32[2,32], index: 3, kind: input, shape index: {}]   ;;  %s1041_s4 = inlined_call_operand.vmem [shape: f32[1,32], index: 4, kind: input, shape index: {}]   ;;  %s1042_s5 = inlined_call_operand.hbm [shape: f32[2,32,256], index: 5, kind: output, shape index: {}]  }
   0x1   :  { %12 = vsyncpa [#allocation3 + $0x1], 0 }
   0x2   :  { %13 = vsyncpa [#allocation4], 0 }
   0x3   :  { %15 = vsyncpa [#allocation4 + $0x1], 0  ;;  %s826_s18 = smov 0   ;;  %s828_s19 = smov 0  }
   0x4   :  { %s830_s20 = smov 0   ;;  %s832_s21 = smov 0  }
   0x5 LB: > { %s847_s22 = sadd.s32 4294967295, %s786_s21   ;;  %s592_s23 = sadd.s32 4294967294, %s786_s21   ;;  %s786_s21 = sphi %s832_s21, %s1057_s21   ;;  %s782_s20 = sphi %s830_s20, %s1056_s20   ;;  %s778_s19 = sphi %s828_s19, %s1055_s19   ;;  %s774_s18 = sphi %s826_s18, %s1054_s18  }
   0x6   : > { %s851_s24 = sadd.s32 1, %s786_s21   ;;  %s28_s25 = sadd.s32 1, %s782_s20 }
   0x7   : > { %s25_s26 = ssub.s32 %s786_s21, %s851_s24  ;;  %p35_p0 = scmp.ne.s32.totalorder %s782_s20, %s778_s19 }
   0x8   : > { %p26_p1 = scmp.eq.s32.totalorder %s25_s26, 0  ;;  %p36_p2 = scmp.eq.s32.totalorder %s786_s21, 0 }
   0x9   : > { %p41_p3 = scmp.ne.s32.totalorder %s778_s19, %s774_s18  ;;  %p42_p4 = scmp.eq.s32.totalorder %s847_s22, 0 }
   0xa   : > { %s863_s27 = scalar_select %p26_p1, %s782_s20, %s28_s25  }
   0xb   : > { %p865_p5 = por %p36_p2, %p35_p0  ;;  %p869_p6 = por %p42_p4, %p41_p3 }
   0xc   : > { %p149_p7 = scmp.eq.s32.totalorder %s847_s22, 1  ;;  %p155_p8 = scmp.eq.s32.totalorder %s592_s23, 1 }
   0xd   : > { %s1046_s29 = scalar_select %p869_p6, 1, 0 }
   0xe   : > { %p646_p10 = scmp.lt.s32.totalorder %s786_s21, 2  ;;  %p876_p11 = por %p149_p7, %p35_p0 }
   0xf   : > { %p880_p12 = por %p155_p8, %p41_p3  ;;  %s187_s7 = sand.u32 1, %s782_s20  }
  0x10   : > { %s1047_s30 = scalar_select %p876_p11, 1, 0 }
  0x11   : > { %s1048_s6 = scalar_select %p880_p12, 1, 0 }
  0x12   : > { %s609_s8 = sshll.u32 %s786_s21, 10  ;;  %s595_s9 = sshll.u32 %s187_s7, 6 }
  0x13   : > { %s889_s12 = scalar_lea.hbm %s1037_s0, %s609_s8  ;;  %s191_s13 = scalar_lea.vmem [#allocation2], %s595_s9 }
  0x14   : > { %s198_s14 = sshll.u32 %s191_s13, 4  ;;  %p893_p13 = pnand %p646_p10, %p865_p5  ;;  %s897_s14 = int_to_ptr.vmem [resolvable:$true] %s198_s14 }
  0x15   : > { %s899_s16 = scalar_lea.sflag [#allocation3], %s187_s7  ;;  %s694_s17 = scalar_lea.hbm %s889_s12, 1024 }
  0x16   : > { %p695_p0 = scmp.ne.s32.totalorder %s889_s12, %s694_s17  ;;  %p696_p1 = pneg %p893_p13 }
  0x17   : > { %s699_s26 = scalar_lea.hbm %s1037_s0, 2048  ;;  %p700_p4 = scmp.lt.s32.totalorder %s889_s12, %s1037_s0 }
  0x18   : > { %p697_p2 = pnand %p696_p1, %p695_p0  ;;  %p701_p5 = scmp.lt.s32.totalorder %s699_s26, %s694_s17 }
  0x1a   : > { %p698_p3 = pneg %p697_p2  ;;  %p702_p7 = por %p701_p5, %p700_p4 }
  0x1c   : > { %p703_p8 = pnand %p702_p7, %p698_p3 }
  0x1e   : > { %706 = shalt.err (!%p703_p8)
}
  0x1f   : > { %s707_s7 = scalar_lea.vmem %s897_s14, 1024  ;;  %s788_s9 = smov [#allocation2]  }
  0x20   : > { %p708_p10 = scmp.ne.s32.totalorder %s897_s14, %s707_s7  ;;  %s712_s10 = sshll.u32 %s788_s9, 4  ;;  %s713_s10 = int_to_ptr.vmem [resolvable:$false] %s712_s10 }
  0x21   : > { %s714_s11 = scalar_lea.vmem %s713_s10, 2048  ;;  %p715_p2 = scmp.lt.s32.totalorder %s897_s14, %s713_s10 }
  0x22   : > { %p710_p9 = pnand %p708_p10, %p696_p1  ;;  %p716_p12 = scmp.lt.s32.totalorder %s714_s11, %s707_s7 }
  0x24   : > { %p711_p0 = pneg %p710_p9  ;;  %p717_p11 = por %p716_p12, %p715_p2 }
  0x26   : > { %p718_p6 = pnand %p717_p11, %p711_p0 }
  0x28   : > { %721 = shalt.err (!%p718_p6)
}
  0x29   : > { %s789_s13 = smov 256   ;;  %s790_s17 = smov 16  }
  0x2a   : > { %641 = dma.hbm_to_vmem [thread:$0]  (!%p893_p13), %s889_s12, 1024, %s897_s14, %s899_s16, %s789_s13, %s789_s13, %s790_s17  }
  0x2b   : > { %p598_p9 = scmp.ge.s32.totalorder %s786_s21, 1  ;;  %p206_p1 = scmp.lt.s32.totalorder %s786_s21, 3 }
  0x2d   : > { %p207_p3 = pnand %p598_p9, %p206_p1 }
  0x2e   : > { %s923_s23 = sand.u32 (!%p207_p3), 1, %s778_s19   ;;  %p1050_p6 = scmp.ne.s32.totalorder (!%p207_p3), %s1046_s29, 0 }
  0x2f   : > { %210 = sbr.rel (%p207_p3) target bundleno = 806 (0x326), region = 40  ;;  %s599_s25 = sshll.u32 (!%p207_p3), %s923_s23, 6 }
  0x30   : > { %s213_s26 = scalar_lea.sflag (!%p207_p3), [#allocation3], %s923_s23  ;;  %s216_s28 = scalar_lea.vmem (!%p207_p3), [#allocation2], %s599_s25 }
  0x34   : > { %765 = dma.done.wait (%p1050_p6), %s213_s26, 1024  }
  0x35   : > { %767 = vsyncadd (%p1050_p6), %s213_s26, 4294966272  ;;  %v933_v0 = vld [vmem:[%s216_s28] sm:$0xff]  ;;  %v935_v1 = vld [vmem:[%s216_s28 + $0x8] sm:$0xff]  ;;  %v791_v12 = vmov 0.0   ;;  %vm792_vm0 = vmmov 0   ;;  %v277_v17 = vlaneseq  ;;  %vm288_vm1 = vcmask 130112  }
  0x36   : > { %v937_v2 = vld [vmem:[%s216_s28 + $0x20] sm:$0xff]  ;;  %v251_v3 = vadd.f32 %v935_v1, %v933_v0  ;;  %v941_v4 = vld [vmem:[%s216_s28 + $0x28] sm:$0xff]  ;;  %v943_v5 = vld [vmem:[%s216_s28 + $0x10] sm:$0xff]  ;;  %618 = vmatprep.subr.mxu0 %v791_v12  ;;  %629 = vmatprep.subr.mxu1 %v791_v12  ;;  %vm295_vm2 = vcmask 195712   ;;  %vm302_vm3 = vcmask 261312   ;;  %vm304_vm4 = vcmask 261120  }
  0x37   : > { %v945_v6 = vld [vmem:[%s216_s28 + $0x18] sm:$0xff]  ;;  %v257_v7 = vadd.f32 %v941_v4, %v937_v2  ;;  %v949_v8 = vld [vmem:[%s216_s28 + $0x30] sm:$0xff]  ;;  %v269_v15 = vld [vmem:[%s1038_s1 + $0x8] sm:$0xff]  ;;  %626 = vmatprep.mubr.msk.f32.mxu0 %vm792_vm0, %v791_v12  ;;  %631 = vmatprep.mubr.msk.f32.mxu1 %vm792_vm0, %v791_v12  ;;  %v278_v18 = vand.u32 127, %v277_v17  ;;  %v280_v19 = vshrl.u32 %v277_v17, 7  ;;  %vm390_vm5 = vcmask 1041408  }
  0x38   : > { %v951_v9 = vld [vmem:[%s216_s28 + $0x38] sm:$0xff]  ;;  %252 = vadd.xlane.f32.xlu0 %v251_v3  ;;  %v254_v10 = vadd.f32 %v945_v6, %v943_v5  ;;  %v270_v14 = vld [vmem:[%s1038_s1 + $0x10] sm:$0xff]  ;;  %v268_v16 = vld [vmem:[%s1038_s1] sm:$0xff]  ;;  %vm386_vm6 = vcmask 15360   ;;  %s242_s29 = scalar_lea.vmem [#allocation5], %s599_s25  ;;  %s610_s14 = sshll.u32 %s847_s22, 10 }
  0x39   : > { %258 = vadd.xlane.f32.xlu1 %v257_v7  ;;  %v260_v11 = vadd.f32 %v951_v9, %v949_v8  ;;  %v271_v13 = vld [vmem:[%s1038_s1 + $0x18] sm:$0xff]  ;;  %v283_v20 = vadd.s32 4294967288, %v278_v18  ;;  %v290_v22 = vadd.s32 4294967280, %v278_v18  ;;  %v297_v23 = vadd.s32 4294967272, %v278_v18  ;;  %v384_v42 = vld [vmem:[%s1040_s3] sm:$0x3]  ;;  %s992_s16 = scalar_lea.hbm %s1042_s5, %s610_s14 }
  0x3a   : > { %619 = vmatpush3.msra.mxu0 %v271_v13  ;;  %v281_v25 = vsub.s32 %v278_v18, %v280_v19  ;;  %630 = vmatpush3.msk.msra.mxu1 %vm390_vm5, %v384_v42  ;;  %v272_v43 = vld [vmem:[%s1039_s2] sm:$0x1]  ;;  %v472_v61 = vsub.s32 0, %v280_v19  ;;  %s519_s12 = sshll.u32 %s242_s29, 4  ;;  %s506_s22 = scalar_lea.sflag [#allocation4], %s923_s23  ;;  %s987_s12 = int_to_ptr.vmem [resolvable:$true] %s519_s12 }
  0x3b   : > { %620 = vmatprep.subr.mxu0 %v791_v12  ;;  %v286_v27 = vsub.s32 %v283_v20, %v280_v19  ;;  %v293_v28 = vsub.s32 %v290_v22, %v280_v19  ;;  %v300_v31 = vsub.s32 %v297_v23, %v280_v19  ;;  %v385_v53 = vld [vmem:[%s1041_s4] sm:$0x1]  ;;  %s722_s8 = scalar_lea.vmem %s987_s12, 1024  ;;  %p1051_p12 = scmp.ne.s32.totalorder %s1047_s30, 0 }
  0x3c   : > { %255 = vadd.xlane.f32.xlu0 %v254_v10  ;;  %621 = vmatpush3.msra.mxu0 %v270_v14  ;;  %p723_p11 = scmp.ne.s32.totalorder %s987_s12, %s722_s8  ;;  %s793_s7 = smov [#allocation5]  }
  0x3d   : > { %261 = vadd.xlane.f32.xlu1 %v260_v11  ;;  %622 = vmatprep.subr.mxu0 %v791_v12  ;;  %s726_s9 = sshll.u32 %s793_s7, 4  ;;  %s727_s9 = int_to_ptr.vmem [resolvable:$false] %s726_s9 }
  0x3e   : > { %623 = vmatpush3.msra.mxu0 %v269_v15  ;;  %p724_p13 = pnand %p723_p11, %p1051_p12  ;;  %s728_s10 = scalar_lea.vmem %s727_s9, 2048 }
  0x3f   : > { %624 = vmatprep.subr.mxu0 %v791_v12  ;;  %p729_p5 = scmp.lt.s32.totalorder %s987_s12, %s727_s9  ;;  %p730_p7 = scmp.lt.s32.totalorder %s728_s10, %s722_s8 }
  0x40   : > { %625 = vmatpush3.msra.mxu0 %v268_v16  ;;  %p725_p4 = pneg %p724_p13 }
  0x41   : > { %p731_p8 = por %p730_p7, %p729_p5 }
  0x43   : > { %p732_p10 = pnand %p731_p8, %p725_p4 }
  0xc1   : > { %v253_v21 = vpop.xlane.xlu0 %252 }
  0xc2   : > { %v259_v24 = vpop.xlane.xlu1 %258  ;;  %v264_v26 = vmul.f32 0.00390625, %v253_v21 }
  0xc3   : > { %v266_v29 = vmul.f32 0.00390625, %v259_v24 }
  0xc4   : > { %v282_v35 = vrot.slane %v264_v26, %v281_v25 }
  0xc5   : > { %v256_v30 = vpop.xlane.xlu0 %255  ;;  %v294_v37 = vrot.slane %v266_v29, %v293_v28 }
  0xc6   : > { %v265_v32 = vmul.f32 0.00390625, %v256_v30  ;;  %v262_v33 = vpop.xlane.xlu1 %261 }
  0xc7   : > { %v267_v34 = vmul.f32 0.00390625, %v262_v33 }
  0xc8   : > { %v287_v36 = vrot.slane %v265_v32, %v286_v27 }
  0xc9   : > { %v301_v38 = vrot.slane %v267_v34, %v300_v31 }
  0xca   : > { %v289_v39 = vsel %vm288_vm1, %v287_v36, %v282_v35 }
  0xcb   : > { %v296_v40 = vsel %vm295_vm2, %v294_v37, %v289_v39 }
  0xcc   : > { %v303_v41 = vsel %vm302_vm3, %v301_v38, %v296_v40 }
  0xcd   : > { %627 = vmatmul.mubr.msk.f32.vlgmr.msra.gmra.mxu0 %vm304_vm4, %v303_v41 }
 0x18d   : > { %v373_v44 = vpop.f32.mrf.mxu0 }
 0x18e   : > { %v374_v45 = vadd.f32 %v373_v44, %v272_v43 }
 0x18f   : > { %v628_v46 = vpop.f32.mrf.mxu0 }
 0x190   : > { %v377_v47 = vsub.f32 0.0, %v374_v45 }
 0x192   : > { %v378_v48 = vmul.f32 1.442695, %v377_v47 }
 0x194   : > { %686 = vpow2.f32 %v378_v48 }
 0x1a1   : > { %v687_v49 = vpop.eup %686 }
 0x1a2   : > { %v380_v50 = vadd.f32 1.0, %v687_v49 }
 0x1a4   : > { %688 = vrcp.f32 %v380_v50 }
 0x1b1   : > { %v689_v51 = vpop.eup %688 }
 0x1b2   : > { %v383_v52 = vmul.f32 %v689_v51, %v374_v45 }
 0x1b4   : > { %632 = vmatmul.mubr.msk.f32.vlgmr.msra.gmra.mxu1 %vm386_vm6, %v383_v52 }
 0x274   : > { %v460_v54 = vpop.f32.mrf.mxu1 }
 0x275   : > { %v461_v55 = vadd.f32 %v460_v54, %v385_v53 }
 0x276   : > { %v633_v56 = vpop.f32.mrf.mxu1 }
 0x277   : > { %v464_v57 = vsub.f32 0.0, %v461_v55 }
 0x279   : > { %v465_v58 = vmul.f32 1.442695, %v464_v57 }
 0x27b   : > { %690 = vpow2.f32 %v465_v58 }
 0x288   : > { %v691_v59 = vpop.eup %690 }
 0x289   : > { %v467_v60 = vadd.f32 1.0, %v691_v59 }
 0x28b   : > { %692 = vrcp.f32 %v467_v60 }
 0x298   : > { %v693_v62 = vpop.eup %692 }
 0x299   : > { %v473_v63 = vrot.slane %v693_v62, %v472_v61 }
 0x29b   : > { %479 = vbcast.lane.b32.xlu1 %v473_v63, 264  ;;  %475 = vbcast.lane.b32.xlu0 %v473_v63, 256 }
 0x29f   : > { %483 = vbcast.lane.b32.xlu1 %v473_v63, 272 }
 0x2a3   : > { %487 = vbcast.lane.b32.xlu1 %v473_v63, 280 }
 0x30d   : > { %v480_v3 = vpop.permute.xlu1 %479  ;;  %v476_v7 = vpop.permute.xlu0 %475 }
 0x30e   : > { %v491_v10 = vmul.f32 %v480_v3, %v943_v5  ;;  %v492_v11 = vmul.f32 %v480_v3, %v945_v6  ;;  %v489_v12 = vmul.f32 %v476_v7, %v933_v0  ;;  %v490_v13 = vmul.f32 %v476_v7, %v935_v1 }
 0x310   : > { %499 = vst [vmem:[%s242_s29 + $0x10] sm:$0xff] %v491_v10  ;;  %500 = vst [vmem:[%s242_s29 + $0x18] sm:$0xff] %v492_v11 }
 0x311   : > { %497 = vst [vmem:[%s242_s29] sm:$0xff] %v489_v12  ;;  %498 = vst [vmem:[%s242_s29 + $0x8] sm:$0xff] %v490_v13  ;;  %v484_v14 = vpop.permute.xlu1 %483 }
 0x312   : > { %v493_v15 = vmul.f32 %v484_v14, %v937_v2  ;;  %v494_v5 = vmul.f32 %v484_v14, %v941_v4 }
 0x314   : > { %501 = vst [vmem:[%s242_s29 + $0x20] sm:$0xff] %v493_v15  ;;  %502 = vst [vmem:[%s242_s29 + $0x28] sm:$0xff] %v494_v5 }
 0x315   : > { %v488_v0 = vpop.permute.xlu1 %487 }
 0x316   : > { %v495_v1 = vmul.f32 %v488_v0, %v949_v8  ;;  %v496_v2 = vmul.f32 %v488_v0, %v951_v9 }
 0x318   : > { %503 = vst [vmem:[%s242_s29 + $0x30] sm:$0xff] %v495_v1  ;;  %504 = vst [vmem:[%s242_s29 + $0x38] sm:$0xff] %v496_v2 }
 0x319   : > { %735 = shalt.err (!%p732_p10)
}
 0x31a   : > { %s736_s11 = scalar_lea.hbm %s992_s16, 1024  ;;  %s740_s26 = scalar_lea.hbm %s1042_s5, 2048 }
 0x31b   : > { %p737_p0 = scmp.ne.s32.totalorder %s992_s16, %s736_s11  ;;  %p741_p1 = scmp.lt.s32.totalorder %s992_s16, %s1042_s5 }
 0x31c   : > { %p742_p3 = scmp.lt.s32.totalorder %s740_s26, %s736_s11 }
 0x31d   : > { %p738_p2 = pnand %p737_p0, %p1051_p12 }
 0x31e   : > { %p743_p6 = por %p742_p3, %p741_p1 }
 0x31f   : > { %p739_p9 = pneg %p738_p2 }
 0x321   : > { %p744_p11 = pnand %p743_p6, %p739_p9 }
 0x323   : > { %747 = shalt.err (!%p744_p11)
}
 0x324   : > { %s794_s14 = smov 256   ;;  %s795_s25 = smov 16  }
 0x325   : > { %636 = dma.vmem_to_hbm [thread:$0]  (%p1051_p12), %s987_s12, 1024, %s992_s16, %s506_s22, %s794_s14, %s794_s14, %s795_s25  }
 0x326 PF: > { %s534_s15 = sand.u32 1, %s774_s18   ;;  %p1052_p13 = scmp.ne.s32.totalorder %s1048_s6, 0 }
 0x327   : > { %p1053_p4 = scmp.ge.s32.totalorder %s786_s21, 2  ;;  %s535_s8 = scalar_lea.sflag [#allocation4], %s534_s15 }
 0x329   : > { %p643_p5 = pnand %p1053_p4, %p1052_p13 }
 0x32b   : > { %p644_p7 = pneg %p643_p5 }
 0x32d   : > { %769 = dma.done.wait (%p644_p7), %s535_s8, 1024  }
 0x32e   : > { %771 = vsyncadd (%p644_p7), %s535_s8, 4294966272  ;;  %p18_p8 = scmp.ge.s32.totalorder %s851_s24, 4   ;;  %s1054_s18 = smov %s778_s19 }
 0x32f   : > { %s1055_s19 = smov %s782_s20  ;;  %s1056_s20 = smov %s863_s27 }
 0x330   : > { %s1057_s21 = smov %s851_s24  ;;  %20 = sbr.rel (!%p18_p8) target bundleno = 5 (0x5), region = 85 }
 0x335   :  { %540 = vsyncpa [#allocation3], 1 }
 0x336   :  { %542 = vsyncpa [#allocation3 + $0x1], 1 }
 0x337   :  { %543 = vsyncpa [#allocation4], 1 }
 0x338   :  { %545 = vsyncpa [#allocation4 + $0x1], 1 }

</bundles_post_ra>
